<compile_context>
chip_gen: v5e
topology: v5e:2x2
jax: 0.10.0
libtpu: 0.0.40
codegen_flags: <defaults>
</compile_context>

<pallas_src>
import functools

import jax
import jax.numpy as jnp
from jax import lax
from jax.experimental import pallas as pl
from jax.experimental.pallas import tpu as pltpu


def _round_up(x, m):
    return ((x + m - 1) // m) * m


def _hardest_ranking_kernel(img_ref, cap_hbm_ref, out_ref,
                            capn_ref, capbuf_ref, cmax_ref, drow_ref,
                            cisum_ref, dma_sem,
                            *, margin, n, n_pad, d_pad, tm, nk):
    k = pl.program_id(0)
    padded = n != n_pad

    # ------------------ one-time init at grid step 0 ------------------
    @pl.when(k == 0)
    def _init():
        cmax_ref[...] = jnp.full(cmax_ref.shape, -jnp.inf, jnp.float32)
        drow_ref[...] = jnp.zeros(drow_ref.shape, jnp.float32)
        cisum_ref[...] = jnp.zeros(cisum_ref.shape, jnp.float32)
        # Captions live in HBM (memory_space=pl.ANY): one manual DMA into a
        # single landing buffer (no double-buffered pipeline copies), then
        # L2-normalize in f32 and park as bf16 MXU operands in VMEM.
        cp = pltpu.make_async_copy(cap_hbm_ref, capbuf_ref, dma_sem.at[0])
        cp.start()
        cp.wait()
        caps = capbuf_ref[...].astype(jnp.float32)
        caps = caps * lax.rsqrt(jnp.sum(caps * caps, axis=1, keepdims=True))
        if padded:
            rid = lax.broadcasted_iota(jnp.int32, (n_pad, 1), 0)
            caps = jnp.where(rid < n, caps, 0.0)   # keep padded rows finite
        capn_ref[...] = caps.astype(jnp.bfloat16)

    row0 = pl.multiple_of(k * tm, tm)

    # -------- normalize current image-row tile (f32 VPU / EUP rsqrt) --------
    imgs = img_ref[...].astype(jnp.float32)                        # (tm, d_pad)
    imgs = imgs * lax.rsqrt(jnp.sum(imgs * imgs, axis=1, keepdims=True))
    rows = row0 + lax.broadcasted_iota(jnp.int32, (tm, 1), 0)      # (tm, 1)
    if padded:
        imgs = jnp.where(rows < n, imgs, 0.0)                      # padded rows -> 0

    # -------- similarity tile: one bf16 MXU matmul, f32 accumulation --------
    sim = lax.dot_general(
        imgs.astype(jnp.bfloat16), capn_ref[...],
        dimension_numbers=(((1,), (1,)), ((), ())),
        preferred_element_type=jnp.float32)                        # (tm, n_pad)

    # -------- diagonal <img_i, cap_i> in both layouts (cheap, off-sim) -------
    cap_rows = capn_ref[pl.ds(row0, tm), :].astype(jnp.float32)    # (tm, d_pad)
    prod = imgs * cap_rows                                         # (tm, d_pad)
    diag_col = jnp.sum(prod, axis=1, keepdims=True)                # (tm, 1) sublane
    ones_row = jnp.ones((1, d_pad), jnp.float32)
    diag_row = lax.dot_general(                                    # (1, tm) lane
        ones_row, prod,
        dimension_numbers=(((1,), (1,)), ((), ())),
        preferred_element_type=jnp.float32)

    # -------- mask diagonal (and any padding) with -inf: one (tm,n) select ---
    cols = lax.broadcasted_iota(jnp.int32, (1, n_pad), 1)          # (1, n_pad)
    keep = rows != cols
    if padded:
        keep = keep & (cols < n) & (rows < n)
    sim_m = jnp.where(keep, sim, -jnp.inf)                         # (tm, n_pad)

    # cost_images contribution: captions are resident, so the row max over
    # j != i is complete for this tile; relu(max) == max(relu) and the zeroed
    # diagonal entry is absorbed by the outer relu.
    row_max = jnp.max(sim_m, axis=1, keepdims=True)                # (tm, 1)
    ci = jnp.maximum(margin + row_max - diag_col, 0.0)
    if padded:
        ci = jnp.where(rows < n, ci, 0.0)
    cisum_ref[...] += jnp.sum(ci, keepdims=True)                   # (1, 1)

    # cost_captions running column max (diag / padded rows already -inf).
    cmax_ref[...] = jnp.maximum(cmax_ref[...],
                                jnp.max(sim_m, axis=0, keepdims=True))

    # Stash this tile's diagonal (lane layout) into row k of the (nk, tm)
    # scratch via a one-hot add (no dynamic-offset lane stores).
    step_hot = lax.broadcasted_iota(jnp.int32, (nk, 1), 0) == k
    drow_ref[...] += jnp.where(step_hot, diag_row, 0.0)

    # ------------------------------ finalize --------------------------------
    @pl.when(k == nk - 1)
    def _fin():
        cc_sum = jnp.zeros((1, 1), jnp.float32)
        for c in range(nk):                                # static unroll (nk small)
            cmax_c = cmax_ref[:, pl.ds(c * tm, tm)]        # (1, tm) static slice
            diag_c = drow_ref[pl.ds(c, 1), :]              # (1, tm)
            cc = jnp.maximum(margin + cmax_c - diag_c, 0.0)
            if padded and (c + 1) * tm > n:
                cid = c * tm + lax.broadcasted_iota(jnp.int32, (1, tm), 1)
                cc = jnp.where(cid < n, cc, 0.0)
            cc_sum = cc_sum + jnp.sum(cc, keepdims=True)
        total = jnp.sum(cisum_ref[...]) + jnp.sum(cc_sum)
        out_ref[0, 0] = total * (1.0 / n)


def hardest_ranking_loss(images, captions, margin=1.0):
    assert images.shape == captions.shape and images.ndim == 2
    n, d = images.shape

    # Pad D to a lane multiple (zeros do not change norms / dot products) and
    # N to a multiple of the row tile; padded rows are masked in-kernel.
    d_pad = max(128, _round_up(d, 128))
    if n <= 512:
        tm = _round_up(n, 8)              # single row tile
    else:
        tm = 512 if d_pad <= 256 else 256  # bigger tiles when D is small
    n_pad = _round_up(n, tm)
    nk = n_pad // tm

    if (n_pad, d_pad) != (n, d):
        pad = ((0, n_pad - n), (0, d_pad - d))
        images = jnp.pad(images, pad)
        captions = jnp.pad(captions, pad)

    kernel = functools.partial(_hardest_ranking_kernel, margin=float(margin),
                               n=n, n_pad=n_pad, d_pad=d_pad, tm=tm, nk=nk)

    img_bytes = jnp.dtype(images.dtype).itemsize
    cap_bytes = jnp.dtype(captions.dtype).itemsize
    vmem_est = (n_pad * d_pad * 2                 # resident bf16 captions
                + n_pad * d_pad * cap_bytes       # one-shot DMA landing buffer
                + 2 * tm * d_pad * img_bytes      # double-buffered image tiles
                + 4 * tm * n_pad * 4              # sim / masked-sim temporaries
                + (n_pad + nk * tm + 16) * 4)     # small accumulators
    vmem_limit = int(min(100 * (1 << 20), max(32 * (1 << 20), int(vmem_est * 1.5))))

    grid_spec = pltpu.PrefetchScalarGridSpec(
        num_scalar_prefetch=0,
        grid=(nk,),
        in_specs=[
            pl.BlockSpec((tm, d_pad), lambda k: (k, 0)),   # image rows: streamed
            pl.BlockSpec(memory_space=pl.ANY),             # captions: stay in HBM
        ],
        out_specs=pl.BlockSpec(memory_space=pltpu.MemorySpace.SMEM),
        scratch_shapes=[
            pltpu.VMEM((n_pad, d_pad), jnp.bfloat16),      # normalized captions
            pltpu.VMEM((n_pad, d_pad), captions.dtype),    # DMA landing buffer
            pltpu.VMEM((1, n_pad), jnp.float32),           # running column max
            pltpu.VMEM((nk, tm), jnp.float32),             # per-tile diag (lane layout)
            pltpu.VMEM((1, 1), jnp.float32),               # cost_images running sum
            pltpu.SemaphoreType.DMA((1,)),                 # caption DMA semaphore
        ],
    )

    out = pl.pallas_call(
        kernel,
        grid_spec=grid_spec,
        out_shape=jax.ShapeDtypeStruct((1, 1), jnp.float32),
        compiler_params=pltpu.CompilerParams(
            dimension_semantics=("arbitrary",),
            vmem_limit_bytes=vmem_limit),
    )(images, captions)
    return out[0, 0]


def _reference(images, captions, margin=1.0):
    images = images / jnp.linalg.norm(images, axis=1, keepdims=True)
    captions = captions / jnp.linalg.norm(captions, axis=1, keepdims=True)
    n = images.shape[0]
    sim = jnp.matmul(images, captions.T, precision=lax.Precision.HIGHEST)
    diag = jnp.diag(sim).reshape(n, 1)
    eye = jnp.eye(n, dtype=bool)

    ci = jnp.where(eye, 0.0, margin + sim - diag)
    ci = jnp.mean(jnp.max(jnp.maximum(ci, 0.0), axis=1))

    cc = jnp.where(eye, 0.0, margin + sim.T - diag)
    cc = jnp.mean(jnp.max(jnp.maximum(cc, 0.0), axis=1))
    return ci + cc


if __name__ == "__main__":
    key = jax.random.PRNGKey(0)

    # (n, d): small base case, tiled case, ragged single-tile, ragged multi-tile.
    shapes = [(8, 32), (1024, 128), (100, 32), (600, 64)]
    for (n_s, d_s) in shapes:
        key, k1, k2 = jax.random.split(key, 3)
        images = jax.random.normal(k1, (n_s, d_s), dtype=jnp.float32)
        captions = jax.random.normal(k2, (n_s, d_s), dtype=jnp.float32)

        loss = jax.block_until_ready(hardest_ranking_loss(images, captions, 1.0))
        ref = _reference(images, captions, 1.0)
        assert jnp.allclose(loss, ref, atol=3e-2, rtol=3e-2), (n_s, d_s, loss, ref)

    print("KERNEL_OK")
</pallas_src>

<mosaic_0001>
module attributes {stable_mosaic.version = 11 : i64} {
  func.func @_hardest_ranking_kernel(%arg0: i32, %arg1: memref<8x128xf32, #tpu.memory_space<vmem>>, %arg2: memref<8x128xf32, #tpu.memory_space<any>>, %arg3: memref<1x1xf32, #tpu.memory_space<smem>>, %arg4: memref<8x128xbf16, #tpu.memory_space<vmem>>, %arg5: memref<8x128xf32, #tpu.memory_space<vmem>>, %arg6: memref<1x8xf32, #tpu.memory_space<vmem>>, %arg7: memref<1x8xf32, #tpu.memory_space<vmem>>, %arg8: memref<1x1xf32, #tpu.memory_space<vmem>>, %arg9: memref<1x!tpu.dma_semaphore, #tpu.memory_space<semaphore_mem>>) attributes {dimension_semantics = [#tpu.dimension_semantics<arbitrary>], iteration_bounds = array<i64: 1>, scalar_prefetch = 0 : i64, scratch_operands = 6 : i64, tpu.core_type = #tpu.core_type<tc>, window_params = [{transform_indices = @transform_0, window_bounds = array<i64: 8, 128>}, {}, {transform_indices = @transform_2, window_bounds = array<i64: 1, 1>}]} {
    %c0_i32 = arith.constant 0 : i32
    %0 = arith.cmpi eq, %arg0, %c0_i32 : i32
    %1 = arith.extui %0 : i1 to i32
    %c0_i32_0 = arith.constant 0 : i32
    %2 = arith.cmpi ne, %1, %c0_i32_0 : i32
    scf.if %2 {
      %cst_30 = arith.constant 0xFF800000 : f32
      %65 = vector.broadcast %cst_30 : f32 to vector<1x8xf32>
      %c0_31 = arith.constant 0 : index
      %c0_32 = arith.constant 0 : index
      %66 = vector.load %arg6[%c0_31, %c0_32] : memref<1x8xf32, #tpu.memory_space<vmem>>, vector<1x8xf32>
      tpu.vector_store %arg6[%c0_31, %c0_32], %65 {strides = array<i32>} : memref<1x8xf32, #tpu.memory_space<vmem>>, vector<1x8xf32>,
      %cst_33 = arith.constant 0.000000e+00 : f32
      %67 = vector.broadcast %cst_33 : f32 to vector<1x8xf32>
      %c0_34 = arith.constant 0 : index
      %c0_35 = arith.constant 0 : index
      %68 = vector.load %arg7[%c0_34, %c0_35] : memref<1x8xf32, #tpu.memory_space<vmem>>, vector<1x8xf32>
      tpu.vector_store %arg7[%c0_34, %c0_35], %67 {strides = array<i32>} : memref<1x8xf32, #tpu.memory_space<vmem>>, vector<1x8xf32>,
      %cst_36 = arith.constant 0.000000e+00 : f32
      %69 = vector.broadcast %cst_36 : f32 to vector<1x1xf32>
      %c0_37 = arith.constant 0 : index
      %c0_38 = arith.constant 0 : index
      %70 = vector.load %arg8[%c0_37, %c0_38] : memref<1x1xf32, #tpu.memory_space<vmem>>, vector<1x1xf32>
      tpu.vector_store %arg8[%c0_37, %c0_38], %69 {strides = array<i32>} : memref<1x1xf32, #tpu.memory_space<vmem>>, vector<1x1xf32>,
      %c0_i32_39 = arith.constant 0 : i32
      %71 = tpu.memref_slice %arg9[%c0_i32_39] : memref<1x!tpu.dma_semaphore, #tpu.memory_space<semaphore_mem>> -> memref<1x!tpu.dma_semaphore, #tpu.memory_space<semaphore_mem>>
      %72 = tpu.memref_squeeze %71 : memref<1x!tpu.dma_semaphore, #tpu.memory_space<semaphore_mem>> -> memref<!tpu.dma_semaphore, #tpu.memory_space<semaphore_mem>>
      tpu.enqueue_dma source(%arg2 : memref<8x128xf32, #tpu.memory_space<any>>) target(%arg5 : memref<8x128xf32, #tpu.memory_space<vmem>>) target_semaphore(%72 : memref<!tpu.dma_semaphore, #tpu.memory_space<semaphore_mem>>)
      %c0_i32_40 = arith.constant 0 : i32
      %73 = tpu.memref_slice %arg9[%c0_i32_40] : memref<1x!tpu.dma_semaphore, #tpu.memory_space<semaphore_mem>> -> memref<1x!tpu.dma_semaphore, #tpu.memory_space<semaphore_mem>>
      %74 = tpu.memref_squeeze %73 : memref<1x!tpu.dma_semaphore, #tpu.memory_space<semaphore_mem>> -> memref<!tpu.dma_semaphore, #tpu.memory_space<semaphore_mem>>
      tpu.wait_dma2 semaphore(%74 : memref<!tpu.dma_semaphore, #tpu.memory_space<semaphore_mem>>) src(%arg2 : memref<8x128xf32, #tpu.memory_space<any>>) dst(%arg5 : memref<8x128xf32, #tpu.memory_space<vmem>>)
      %c0_41 = arith.constant 0 : index
      %c0_42 = arith.constant 0 : index
      %75 = vector.load %arg5[%c0_41, %c0_42] : memref<8x128xf32, #tpu.memory_space<vmem>>, vector<8x128xf32>
      %76 = arith.mulf %75, %75 : vector<8x128xf32>
      %cst_43 = arith.constant dense<0.000000e+00> : vector<8xf32>
      %77 = vector.multi_reduction <add>, %76, %cst_43 [1] : vector<8x128xf32> to vector<8xf32>
      %78 = vector.shape_cast %77 : vector<8xf32> to vector<8x1xf32>
      %79 = math.rsqrt %78 : vector<8x1xf32>
      %80 = vector.broadcast %79 : vector<8x1xf32> to vector<8x128xf32>
      %81 = arith.mulf %75, %80 : vector<8x128xf32>
      %82 = arith.truncf %81 : vector<8x128xf32> to vector<8x128xbf16>
      %c0_44 = arith.constant 0 : index
      %c0_45 = arith.constant 0 : index
      %83 = vector.load %arg4[%c0_44, %c0_45] : memref<8x128xbf16, #tpu.memory_space<vmem>>, vector<8x128xbf16>
      tpu.vector_store %arg4[%c0_44, %c0_45], %82 {strides = array<i32>} : memref<8x128xbf16, #tpu.memory_space<vmem>>, vector<8x128xbf16>,
    } else {
    }
    %c8_i32 = arith.constant 8 : i32
    %3 = arith.muli %arg0, %c8_i32 : i32
    %4 = tpu.assume_multiple %3, 8 : i32
    %c0 = arith.constant 0 : index
    %c0_1 = arith.constant 0 : index
    %5 = vector.load %arg1[%c0, %c0_1] : memref<8x128xf32, #tpu.memory_space<vmem>>, vector<8x128xf32>
    %6 = arith.mulf %5, %5 : vector<8x128xf32>
    %cst = arith.constant dense<0.000000e+00> : vector<8xf32>
    %7 = vector.multi_reduction <add>, %6, %cst [1] : vector<8x128xf32> to vector<8xf32>
    %8 = vector.shape_cast %7 : vector<8xf32> to vector<8x1xf32>
    %9 = math.rsqrt %8 : vector<8x1xf32>
    %10 = vector.broadcast %9 : vector<8x1xf32> to vector<8x128xf32>
    %11 = arith.mulf %5, %10 : vector<8x128xf32>
    %12 = tpu.iota {dimensions = array<i32: 0>} : vector<8x1xi32>
    %13 = vector.broadcast %4 : i32 to vector<8x1xi32>
    %14 = arith.addi %13, %12 : vector<8x1xi32>
    %15 = arith.truncf %11 : vector<8x128xf32> to vector<8x128xbf16>
    %c0_2 = arith.constant 0 : index
    %c0_3 = arith.constant 0 : index
    %16 = vector.load %arg4[%c0_2, %c0_3] : memref<8x128xbf16, #tpu.memory_space<vmem>>, vector<8x128xbf16>
    %cst_4 = arith.constant dense<0.000000e+00> : vector<8x8xf32>
    %17 = tpu.matmul %15, %16, %cst_4 {dimension_numbers = #tpu.dot_dimension_numbers<[1], [1], [0], [0], [0, 0, 1, 0], [], []>} : vector<8x128xbf16>, vector<8x128xbf16>, vector<8x8xf32> -> vector<8x8xf32>
    %18 = arith.index_cast %4 : i32 to index
    %c0_5 = arith.constant 0 : index
    %19 = vector.load %arg4[%18, %c0_5] : memref<8x128xbf16, #tpu.memory_space<vmem>>, vector<8x128xbf16>
    %20 = arith.extf %19 : vector<8x128xbf16> to vector<8x128xf32>
    %21 = arith.mulf %11, %20 : vector<8x128xf32>
    %cst_6 = arith.constant dense<0.000000e+00> : vector<8xf32>
    %22 = vector.multi_reduction <add>, %21, %cst_6 [1] : vector<8x128xf32> to vector<8xf32>
    %23 = vector.shape_cast %22 : vector<8xf32> to vector<8x1xf32>
    %cst_7 = arith.constant 1.000000e+00 : f32
    %24 = vector.broadcast %cst_7 : f32 to vector<1x128xf32>
    %cst_8 = arith.constant dense<0.000000e+00> : vector<1x8xf32>
    %25 = tpu.matmul %24, %21, %cst_8 {dimension_numbers = #tpu.dot_dimension_numbers<[1], [1], [0], [0], [0, 0, 1, 0], [], []>} : vector<1x128xf32>, vector<8x128xf32>, vector<1x8xf32> -> vector<1x8xf32>
    %26 = tpu.iota {dimensions = array<i32: 1>} : vector<1x8xi32>
    %27 = vector.broadcast %14 : vector<8x1xi32> to vector<8x8xi32>
    %28 = vector.broadcast %26 : vector<1x8xi32> to vector<8x8xi32>
    %29 = arith.cmpi ne, %27, %28 : vector<8x8xi32>
    %cst_9 = arith.constant 0xFF800000 : f32
    %30 = vector.broadcast %cst_9 : f32 to vector<8x8xf32>
    %31 = arith.select %29, %17, %30 : vector<8x8xi1>, vector<8x8xf32>
    %cst_10 = arith.constant dense<0xFF800000> : vector<8xf32>
    %32 = vector.multi_reduction <maximumf>, %31, %cst_10 [1] : vector<8x8xf32> to vector<8xf32>
    %33 = vector.shape_cast %32 : vector<8xf32> to vector<8x1xf32>
    %cst_11 = arith.constant 1.000000e+00 : f32
    %34 = vector.broadcast %cst_11 : f32 to vector<8x1xf32>
    %35 = arith.addf %34, %33 : vector<8x1xf32>
    %36 = arith.subf %35, %23 : vector<8x1xf32>
    %cst_12 = arith.constant 0.000000e+00 : f32
    %37 = vector.broadcast %cst_12 : f32 to vector<8x1xf32>
    %38 = arith.maximumf %36, %37 : vector<8x1xf32>
    %c0_13 = arith.constant 0 : index
    %c0_14 = arith.constant 0 : index
    %39 = vector.load %arg8[%c0_13, %c0_14] : memref<1x1xf32, #tpu.memory_space<vmem>>, vector<1x1xf32>
    %40 = vector.shape_cast %38 : vector<8x1xf32> to vector<1x8x1xf32>
    %cst_15 = arith.constant dense<0.000000e+00> : vector<1xf32>
    %41 = vector.multi_reduction <add>, %40, %cst_15 [1, 2] : vector<1x8x1xf32> to vector<1xf32>
    %42 = vector.shape_cast %41 : vector<1xf32> to vector<1x1x1xf32>
    %43 = vector.extract %42[0, 0, 0] : f32 from vector<1x1x1xf32>
    %44 = vector.broadcast %43 : f32 to vector<1x1xf32>
    %45 = arith.addf %39, %44 : vector<1x1xf32>
    %c0_16 = arith.constant 0 : index
    %c0_17 = arith.constant 0 : index
    %46 = vector.load %arg8[%c0_16, %c0_17] : memref<1x1xf32, #tpu.memory_space<vmem>>, vector<1x1xf32>
    tpu.vector_store %arg8[%c0_16, %c0_17], %45 {strides = array<i32>} : memref<1x1xf32, #tpu.memory_space<vmem>>, vector<1x1xf32>,
    %c0_18 = arith.constant 0 : index
    %c0_19 = arith.constant 0 : index
    %47 = vector.load %arg6[%c0_18, %c0_19] : memref<1x8xf32, #tpu.memory_space<vmem>>, vector<1x8xf32>
    %cst_20 = arith.constant dense<0xFF800000> : vector<8xf32>
    %48 = vector.multi_reduction <maximumf>, %31, %cst_20 [0] : vector<8x8xf32> to vector<8xf32>
    %49 = vector.shape_cast %48 : vector<8xf32> to vector<1x8xf32>
    %50 = arith.maximumf %47, %49 : vector<1x8xf32>
    %c0_21 = arith.constant 0 : index
    %c0_22 = arith.constant 0 : index
    %51 = vector.load %arg6[%c0_21, %c0_22] : memref<1x8xf32, #tpu.memory_space<vmem>>, vector<1x8xf32>
    tpu.vector_store %arg6[%c0_21, %c0_22], %50 {strides = array<i32>} : memref<1x8xf32, #tpu.memory_space<vmem>>, vector<1x8xf32>,
    %52 = tpu.iota {dimensions = array<i32: 0>} : vector<1x1xi32>
    %53 = vector.broadcast %arg0 : i32 to vector<1x1xi32>
    %54 = arith.cmpi eq, %52, %53 : vector<1x1xi32>
    %c0_23 = arith.constant 0 : index
    %c0_24 = arith.constant 0 : index
    %55 = vector.load %arg7[%c0_23, %c0_24] : memref<1x8xf32, #tpu.memory_space<vmem>>, vector<1x8xf32>
    %cst_25 = arith.constant 0.000000e+00 : f32
    %56 = vector.shape_cast %54 : vector<1x1xi1> to vector<1x1xi1>
    %57 = vector.broadcast %56 : vector<1x1xi1> to vector<1x8xi1>
    %58 = vector.broadcast %cst_25 : f32 to vector<1x8xf32>
    %59 = arith.select %57, %25, %58 : vector<1x8xi1>, vector<1x8xf32>
    %60 = arith.addf %55, %59 : vector<1x8xf32>
    %c0_26 = arith.constant 0 : index
    %c0_27 = arith.constant 0 : index
    %61 = vector.load %arg7[%c0_26, %c0_27] : memref<1x8xf32, #tpu.memory_space<vmem>>, vector<1x8xf32>
    tpu.vector_store %arg7[%c0_26, %c0_27], %60 {strides = array<i32>} : memref<1x8xf32, #tpu.memory_space<vmem>>, vector<1x8xf32>,
    %c0_i32_28 = arith.constant 0 : i32
    %62 = arith.cmpi eq, %arg0, %c0_i32_28 : i32
    %63 = arith.extui %62 : i1 to i32
    %c0_i32_29 = arith.constant 0 : i32
    %64 = arith.cmpi ne, %63, %c0_i32_29 : i32
    scf.if %64 {
      %cst_30 = arith.constant 0.000000e+00 : f32
      %65 = vector.broadcast %cst_30 : f32 to vector<1x1xf32>
      %c0_31 = arith.constant 0 : index
      %c0_32 = arith.constant 0 : index
      %66 = vector.load %arg6[%c0_31, %c0_32] : memref<1x8xf32, #tpu.memory_space<vmem>>, vector<1x8xf32>
      %c0_33 = arith.constant 0 : index
      %c0_34 = arith.constant 0 : index
      %67 = vector.load %arg7[%c0_33, %c0_34] : memref<1x8xf32, #tpu.memory_space<vmem>>, vector<1x8xf32>
      %cst_35 = arith.constant 1.000000e+00 : f32
      %68 = vector.broadcast %cst_35 : f32 to vector<1x8xf32>
      %69 = arith.addf %68, %66 : vector<1x8xf32>
      %70 = arith.subf %69, %67 : vector<1x8xf32>
      %cst_36 = arith.constant 0.000000e+00 : f32
      %71 = vector.broadcast %cst_36 : f32 to vector<1x8xf32>
      %72 = arith.maximumf %70, %71 : vector<1x8xf32>
      %73 = vector.shape_cast %72 : vector<1x8xf32> to vector<1x1x8xf32>
      %cst_37 = arith.constant dense<0.000000e+00> : vector<1xf32>
      %74 = vector.multi_reduction <add>, %73, %cst_37 [1, 2] : vector<1x1x8xf32> to vector<1xf32>
      %75 = vector.shape_cast %74 : vector<1xf32> to vector<1x1x1xf32>
      %76 = vector.extract %75[0, 0, 0] : f32 from vector<1x1x1xf32>
      %77 = vector.broadcast %76 : f32 to vector<1x1xf32>
      %78 = arith.addf %65, %77 : vector<1x1xf32>
      %c0_38 = arith.constant 0 : index
      %c0_39 = arith.constant 0 : index
      %79 = vector.load %arg8[%c0_38, %c0_39] : memref<1x1xf32, #tpu.memory_space<vmem>>, vector<1x1xf32>
      %80 = vector.shape_cast %79 : vector<1x1xf32> to vector<1x1x1xf32>
      %cst_40 = arith.constant dense<0.000000e+00> : vector<1xf32>
      %81 = vector.multi_reduction <add>, %80, %cst_40 [1, 2] : vector<1x1x1xf32> to vector<1xf32>
      %82 = vector.shape_cast %81 : vector<1xf32> to vector<1x1x1xf32>
      %83 = vector.extract %82[0, 0, 0] : f32 from vector<1x1x1xf32>
      %84 = vector.shape_cast %78 : vector<1x1xf32> to vector<1x1x1xf32>
      %cst_41 = arith.constant dense<0.000000e+00> : vector<1xf32>
      %85 = vector.multi_reduction <add>, %84, %cst_41 [1, 2] : vector<1x1x1xf32> to vector<1xf32>
      %86 = vector.shape_cast %85 : vector<1xf32> to vector<1x1x1xf32>
      %87 = vector.extract %86[0, 0, 0] : f32 from vector<1x1x1xf32>
      %88 = arith.addf %83, %87 : f32
      %cst_42 = arith.constant 1.250000e-01 : f32
      %89 = arith.mulf %88, %cst_42 : f32
      %c0_43 = arith.constant 0 : index
      %c0_44 = arith.constant 0 : index
      %90 = memref.load %arg3[%c0_43, %c0_44] : memref<1x1xf32, #tpu.memory_space<smem>>
      memref.store %89, %arg3[%c0_43, %c0_44] : memref<1x1xf32, #tpu.memory_space<smem>>
    } else {
    }
    return
  }
  func.func @transform_0(%arg0: i32) -> (i32, i32) {
    %c0_i32 = arith.constant 0 : i32
    %c0_i32_0 = arith.constant 0 : i32
    return %arg0, %c0_i32 : i32, i32
  }
  func.func @transform_2(%arg0: i32) -> (i32, i32) {
    %c0_i32 = arith.constant 0 : i32
    %c0_i32_0 = arith.constant 0 : i32
    %c0_i32_1 = arith.constant 0 : i32
    return %c0_i32, %c0_i32_0 : i32, i32
  }
}

</mosaic_0001>

<bundles_post_ra>
// kernel: tpu_custom_call.1
= control target key start
LH: loop header
LB: loop body
LE: loop exit
PB: predicated region body
PF: predicated region fallthrough
CT: control target
= control target key end

     0   :  { %7 = vsyncpa [#allocation9], 0  ;;  %s349_s0 = inlined_call_operand.hbm [shape: f32[8,128], index: 0, kind: input, shape index: {}]   ;;  %s350_s1 = inlined_call_operand.hbm [shape: f32[8,128], index: 1, kind: input, shape index: {}]   ;;  %s351_s2 = inlined_call_operand.hbm [shape: f32[1,1], index: 2, kind: output, shape index: {}]  }
   0x1   :  { %8 = vsyncpa [#allocation10], 0  ;;  %s14_s11 = sshll.u32 %s349_s0, 4  ;;  %s312_s12 = smov [#allocation8]   ;;  %s15_s11 = int_to_ptr.hbm [resolvable:$true] %s14_s11 }
   0x2   :  { %s16_s13 = sshll.u32 %s312_s12, 4  ;;  %s17_s13 = int_to_ptr.vmem [resolvable:$true] %s16_s13 }
   0x3   :  { %19 = dma.hbm_to_vmem [thread:$0]  %s15_s11, 128, %s17_s13, [#allocation9]  }
   0x4   :  { %306 = dma.done.wait [#allocation9], 128  }
   0x5   :  { %307 = vsyncadd [#allocation9], 4294967168  ;;  %vm29_vm0 = vcmask 57344   ;;  %vm32_vm1 = vcmask 0   ;;  %v313_v0 = vmov -inf   ;;  %s41_s16 = sshll.u32 %s350_s1, 4  ;;  %s42_s16 = int_to_ptr.hbm [resolvable:$true] %s41_s16 }
   0x6   :  { %30 = vst.msk [vmem:[#allocation4] sm:$0x1] %vm29_vm0, %v313_v0  ;;  %v314_v1 = vmov 0.0   ;;  %s315_s0 = smov [#allocation3]  }
   0x7   :  { %31 = vst.msk [vmem:[#allocation5] sm:$0x1] %vm29_vm0, %v314_v1  ;;  %s43_s17 = sshll.u32 %s315_s0, 4  ;;  %s44_s17 = int_to_ptr.vmem [resolvable:$true] %s43_s17 }
   0x8   :  { %33 = vst.msk [vmem:[#allocation6] sm:$0x1] %vm32_vm1, %v314_v1  ;;  %46 = dma.hbm_to_vmem [thread:$0]  %s42_s16, 128, %s44_s17, [#allocation7] }
   0x9   :  { %308 = dma.done.wait [#allocation7], 128 }
   0xa   :  { %309 = vsyncadd [#allocation7], 4294967168  ;;  %v50_v2 = vld [vmem:[#allocation3] sm:$0xff]  ;;  %v68_v4 = vld [vmem:[#allocation8] sm:$0xff]  ;;  %v316_v30 = vmov 1.0   ;;  %v83_v31 = vlaneseq  ;;  %vm135_vm10 = vcmask 64512  }
   0xb   :  { %v51_v3 = vmul.f32 %v50_v2, %v50_v2  ;;  %v69_v5 = vmul.f32 %v68_v4, %v68_v4  ;;  %vm143_vm11 = vcmask 7168   ;;  %s210_s21 = sshll.u32 %s351_s2, 4  ;;  %s317_s25 = smov [#allocation11]   ;;  %s211_s21 = int_to_ptr.hbm [resolvable:$true] %s210_s21 }
   0xc   :  { %v84_v32 = vshrl.u32 %v83_v31, 7  ;;  %v132_v33 = vand.u32 127, %v83_v31 }
   0xd   :  { %52 = vadd.xlane.f32.xlu0 %v51_v3  ;;  %v158_v47 = vld [vmem:[#allocation4] sm:$0x1] }
   0xe   :  { %vm133_vm8 = vcmp.ne.s32.totalorder %v84_v32, %v132_v33  ;;  %vm169_vm9 = vcmp.eq.s32.totalorder %v84_v32, 0  ;;  %v170_v34 = vld [vmem:[#allocation5] sm:$0x1] }
  0x15   :  { %70 = vadd.xlane.f32.xlu0 %v69_v5 }
  0x80   :  { %v53_v6 = vpop.xlane.xlu0 %52 }
  0x81   :  { %242 = vrsqrt.f32 %v53_v6  ;;  %vm60_vm3 = vweird.f32 %v53_v6 }
  0x87   :  { %v243_v7 = vpop.eup %242 }
  0x88   :  { %v55_v8 = vmul.f32 %v243_v7, %v53_v6  ;;  %v71_v9 = vpop.xlane.xlu0 %70  ;;  %vm61_vm2 = vweird.f32 %v243_v7 }
  0x89   :  { %244 = vrsqrt.f32 %v71_v9  ;;  %vm62_vm4 = vmor %vm60_vm3, %vm61_vm2  ;;  %vm78_vm5 = vweird.f32 %v71_v9 }
  0x8a   :  { %v56_v10 = vmul.f32 %v243_v7, %v55_v8 }
  0x8c   :  { %v57_v11 = vmul.f32 0.5, %v56_v10 }
  0x8e   :  { %v58_v12 = vsub.f32 1.5, %v57_v11 }
  0x8f   :  { %v245_v13 = vpop.eup %244 }
  0x90   :  { %v59_v14 = vmul.f32 %v243_v7, %v58_v12  ;;  %v73_v15 = vmul.f32 %v245_v13, %v71_v9  ;;  %vm79_vm6 = vweird.f32 %v245_v13  ;;  %v142_v12 = vld [vmem:[#allocation6] sm:$0x1] }
  0x91   :  { %vm80_vm7 = vmor %vm78_vm5, %vm79_vm6 }
  0x92   :  { %v63_v16 = vsel %vm62_vm4, %v243_v7, %v59_v14  ;;  %v74_v17 = vmul.f32 %v245_v13, %v73_v15 }
  0x93   :  { %v64_v18 = vmul.f32 %v63_v16, %v50_v2 }
  0x94   :  { %v75_v19 = vmul.f32 0.5, %v74_v17 }
  0x95   :  { %v65_v20 = vpack.c.bf16 %v64_v18, %v64_v18 }
  0x96   :  { %v76_v21 = vsub.f32 1.5, %v75_v19 }
  0x97   :  { %66 = vst [vmem:[#allocation2] sm:$0xf] %v65_v20 }
  0x98   :  { %v77_v22 = vmul.f32 %v245_v13, %v76_v21 }
  0x9a   :  { %v81_v23 = vsel %vm80_vm7, %v245_v13, %v77_v22 }
  0x9b   :  { %v82_v26 = vmul.f32 %v81_v23, %v68_v4 }
  0x9d   :  { %v87_v29 = vpack.c.bf16 %v82_v26, %v82_v26 }
  0x9e   :  { %v88_v24 = vld [vmem:[#allocation2] sm:$0xf] }
  0x9f   :  { %v106_v25 = vld [vmem:[#allocation2] sm:$0xf]  ;;  %96 = vmatpush.bf16.xpose.msra.mxu0 %v88_v24 }
  0xa0   :  { %v107_v27 = vunpack.c.l.bf16 %v106_v25 }
  0xa2   :  { %v108_v28 = vmul.f32 %v107_v27, %v82_v26 }
  0xa4   :  { %126 = vmatpush.xpose.msra.mxu1 %v108_v28 }
  0xa6   :  { %97 = vmatmul.bf16.vlgmr.msra.gmra.mxu0 %v87_v29 }
  0xa7   :  { %127 = vmatmul.f32.vlgmr.msra.gmra.mxu1 %v316_v30 }
 0x123   :  { %v98_v35 = vpop.f32.mrf.mxu0 }
 0x124   :  { %v128_v36 = vpop.f32.mrf.mxu1  ;;  %v134_v37 = vsel %vm133_vm8, %v98_v35, -inf }
 0x125   :  { %v173_v38 = vsel %vm169_vm9, %v128_v36, 0.0  ;;  %v136_v39 = vsel %vm135_vm10, %v134_v37, -inf }
 0x126   :  { %v174_v40 = vadd.f32 %v173_v38, %v170_v34  ;;  %v159_v41 = vrot.slane %v136_v39, 4  ;;  %137 = vmax.xlane.f32.xlu1 %v136_v39 }
 0x128   :  { %175 = vst.msk [vmem:[#allocation5] sm:$0x1] %vm29_vm0, %v174_v40  ;;  %v160_v42 = vmax.f32 %v136_v39, %v159_v41 }
 0x12a   :  { %v161_v43 = vrot.slane %v160_v42, 2 }
 0x12b   :  { %v100_v44 = vpop.f32.mrf.mxu0 }
 0x12c   :  { %v162_v45 = vmax.f32 %v160_v42, %v161_v43 }
 0x12e   :  { %v163_v46 = vrot.slane %v162_v45, 1  ;;  %109 = vadd.xlane.f32.xlu1 %v108_v28 }
 0x12f   :  { %v180_v56 = vld [vmem:[#allocation5] sm:$0x1] }
 0x130   :  { %v164_v48 = vmax.f32 %v162_v45, %v163_v46 }
 0x132   :  { %v165_v49 = vmax.f32 %v158_v47, %v164_v48 }
 0x134   :  { %167 = vst.msk [vmem:[#allocation4] sm:$0x1] %vm29_vm0, %v165_v49 }
 0x13b   :  { %v179_v51 = vld [vmem:[#allocation4] sm:$0x1] }
 0x13c   :  { %v181_v55 = vadd.f32 1.0, %v179_v51 }
 0x13e   :  { %v182_v59 = vsub.f32 %v181_v55, %v180_v56 }
 0x140   :  { %v183_v60 = vmax.f32 %v182_v59, 0.0 }
 0x142   :  { %v184_v61 = vsel %vm29_vm0, %v183_v60, 0.0 }
 0x199   :  { %v138_v50 = vpop.xlane.xlu1 %137 }
 0x19a   :  { %v139_v52 = vadd.f32 1.0, %v138_v50 }
 0x1a1   :  { %v110_v53 = vpop.xlane.xlu1 %109 }
 0x1a2   :  { %v140_v54 = vsub.f32 %v139_v52, %v110_v53 }
 0x1a4   :  { %v141_v57 = vmax.f32 %v140_v54, 0.0 }
 0x1a6   :  { %v144_v58 = vsel %vm143_vm11, %v141_v57, 0.0 }
 0x1a7   :  { %145 = vadd.xlane.f32.xlu2 %v144_v58 }
 0x1af   :  { %185 = vadd.xlane.f32.xlu2 %v184_v61 }
 0x21a   :  { %v146_v62 = vpop.xlane.xlu2 %145 }
 0x21b   :  { %v147_v63 = vrot.slane %v146_v62, 4 }
 0x21d   :  { %v148_v0 = vadd.f32 %v147_v63, %v146_v62 }
 0x21f   :  { %v149_v1 = vrot.slane %v148_v0, 2 }
 0x221   :  { %v150_v2 = vadd.f32 %v149_v1, %v148_v0 }
 0x222   :  { %v186_v3 = vpop.xlane.xlu2 %185 }
 0x223   :  { %v187_v4 = vrot.slane %v186_v3, 4  ;;  %v151_v5 = vrot.slane %v150_v2, 1 }
 0x225   :  { %v188_v6 = vadd.f32 %v187_v4, %v186_v3  ;;  %v152_v7 = vadd.f32 %v151_v5, %v150_v2 }
 0x227   :  { %v189_v8 = vrot.slane %v188_v6, 2  ;;  %230 = vpush %v152_v7 }
 0x229   :  { %v190_v9 = vadd.f32 %v189_v8, %v188_v6 }
 0x22b   :  { %v191_v10 = vrot.slane %v190_v9, 1 }
 0x22d   :  { %v192_v11 = vadd.f32 %v191_v10, %v190_v9 }
 0x22f   :  { %232 = vpush %v192_v11 }
 0x258   :  { %s231_s1 = spop %230 }
 0x259   :  { %v154_v13 = vstv %s231_s1 }
 0x25a   :  { %v155_v14 = vadd.f32 %v154_v13, %v142_v12 }
 0x25c   :  { %157 = vst.msk [vmem:[#allocation6] sm:$0x1] %vm32_vm1, %v155_v14 }
 0x260   :  { %s233_s18 = spop %232 }
 0x263   :  { %v196_v15 = vld [vmem:[#allocation6] sm:$0x1] }
 0x264   :  { %234 = vpush %v196_v15 }
 0x295   :  { %s235_s22 = spop %234 }
 0x296   :  { %s201_s23 = sadd.f32 %s235_s22, %s233_s18 }
 0x298   :  { %s202_s24 = smul.f32 0.125, %s201_s23 }
 0x29a   :  { %204 = sst [smem:[#allocation11]] %s202_s24 }
 0x29b   :  { %213 = dma.smem_to_hbm %s317_s25, 16, %s211_s21, [#allocation10]  }
 0x29c   :  { %310 = dma.done.wait [#allocation10], 16  }
 0x29d   :  { %311 = vsyncadd [#allocation10], 4294967280 }
 0x29e   :  { %218 = sfence }
 0x29f   :  { %219 = vsyncpa [#allocation9], 1 }
 0x2a0   :  { %220 = vsyncpa [#allocation10], 1 }
 0x2a1   :  { %221 = vsyncmov [#allocation7] }
 0x2a4   :  { %s222_s26 = vpop.sfrf %221 }
 0x2a5   :  { %p229_p0 = scmp.ne.s32.totalorder %s222_s26, 0 }
 0x2a7   :  { %226 = shalt.err (%p229_p0)  }

</bundles_post_ra>
